<compile_context>
chip_gen: v6e
topology: v6e:2x2x1
jax: 0.10.0
libtpu: 0.0.40
codegen_flags: <defaults>
</compile_context>

<pallas_src>
import math
import numpy as np
import jax
import jax.numpy as jnp
from jax.experimental import pallas as pl
from jax.experimental.pallas import tpu as pltpu

N_FFT = 400              # torchaudio.transforms.Spectrogram() default
HOP = 200                # win_length // 2 (exact 50% overlap)
N_FREQ = N_FFT // 2 + 1  # onesided = 201
F_PAD = 256              # lane-padded one-sided bin count
F2 = 2 * F_PAD           # 512 : [re(256) | im(256)]

_VMEM_LIMIT = 32 * 1024 * 1024   # explicit scoped-VMEM limit (safe on v5e/v6e/v7x)


def _round_up(x, m):
    return (x + m - 1) // m * m


# ------------------------------ Pallas kernels ------------------------------

def _rows_matmul_kernel(x_ref, w_ref, o_ref):
    # Pure MXU: o = x @ w with f32 accumulation, cast at store.
    o_ref[...] = jnp.dot(x_ref[...], w_ref[...],
                         preferred_element_type=jnp.float32).astype(o_ref.dtype)


def _tiled_rows_matmul(x, w, out_dtype):
    """Row-tiled (R,K)@(K,N) with a VMEM-resident weight and a parallel grid.

    No host-side zero-padding of the activation: if the rows fit one tile the
    block is exact; otherwise the ragged last block is clamped by Pallas
    (out-of-range input rows only produce out-of-range output rows, which are
    never written back)."""
    r_tot, k = x.shape
    k2, n = w.shape
    assert k == k2
    isz = jnp.dtype(x.dtype).itemsize
    cap = 2048 if isz <= 2 else 1024          # f32 tiles capped for v7x VMEM
    tile = r_tot if r_tot <= cap else cap
    grid = (pl.cdiv(r_tot, tile),)
    cost = pl.CostEstimate(
        flops=2 * r_tot * k * n,
        transcendentals=0,
        bytes_accessed=(r_tot * k * isz
                        + k * n * jnp.dtype(w.dtype).itemsize
                        + r_tot * n * jnp.dtype(out_dtype).itemsize))
    return pl.pallas_call(
        _rows_matmul_kernel,
        grid=grid,
        in_specs=[pl.BlockSpec((tile, k), lambda i: (i, 0)),
                  pl.BlockSpec((k, n), lambda i: (0, 0))],   # weight stays resident
        out_specs=pl.BlockSpec((tile, n), lambda i: (i, 0)),
        out_shape=jax.ShapeDtypeStruct((r_tot, n), out_dtype),
        compiler_params=pltpu.CompilerParams(
            dimension_semantics=("parallel",),
            vmem_limit_bytes=_VMEM_LIMIT),
        cost_estimate=cost,
    )(x, w)


def _resample_istft_ola_kernel(rc_ref, rn_ref, spec_ref, wl_ref, wr_ref, o_ref):
    """Fused Resample + ISTFT + overlap-add for one (batch, slot-tile).

    rc/rn: (G, n_frames) rows of R for output frames i and i+1 of each slot.
    spec:  (n_frames, 512) complex-as-[re|im] spectrogram of this batch item.
    wl/wr: (512, 200) ISTFT halves with the OLA envelope folded in.
    o:     (G, 200) reconstructed waveform samples for these slots.
    """
    t_cur = jnp.dot(rc_ref[...], spec_ref[...], preferred_element_type=jnp.float32)
    t_nxt = jnp.dot(rn_ref[...], spec_ref[...], preferred_element_type=jnp.float32)
    dt = wl_ref.dtype
    # y[i] = wframes[i+1, 0:HOP] + wframes[i, HOP:N_FFT], envelope pre-folded.
    y = (jnp.dot(t_nxt.astype(dt), wl_ref[...], preferred_element_type=jnp.float32)
         + jnp.dot(t_cur.astype(dt), wr_ref[...], preferred_element_type=jnp.float32))
    o_ref[...] = y.astype(o_ref.dtype)


def _pick_slot_tile(t_slots, n_frames, itemsize, budget=28 * 1024 * 1024):
    """Largest slot tile (multiple of 8, <=512) whose double-buffered working set
    fits the VMEM budget on every generation (incl. v7x's 64 MiB)."""
    for g in (512, 256, 128, 64, 32, 16, 8):
        g_eff = min(g, _round_up(t_slots, 8))
        per_step = (2 * (2 * g_eff * n_frames * itemsize)    # R_cur + R_nxt (dbl-buf)
                    + 2 * (n_frames * F2 * itemsize)         # spec[b]       (dbl-buf)
                    + 2 * (2 * F2 * HOP * itemsize)          # W_L + W_R
                    + 2 * (g_eff * HOP * 4))                 # f32 output tile
        if per_step <= budget or g == 8:
            return g_eff
    return 8


def _resample_istft_ola(spec, r_np, w_ist_np, env_np, compute_dtype):
    """out[b, i*HOP:(i+1)*HOP] = (R[i+1] @ spec[b]) @ W_L + (R[i] @ spec[b]) @ W_R."""
    b, n_frames, _ = spec.shape
    t_out = r_np.shape[0]
    t_slots = t_out - 1
    isz = jnp.dtype(compute_dtype).itemsize

    g = _pick_slot_tile(t_slots, n_frames, isz)
    n_tj = pl.cdiv(t_slots, g)
    rows_pad = n_tj * g

    # Row-shifted copies of R (padding rows are zero -> padded slots are zero).
    r_cur = np.zeros((rows_pad, n_frames), dtype=np.float64)
    r_nxt = np.zeros((rows_pad, n_frames), dtype=np.float64)
    r_cur[:t_slots] = r_np[:t_slots]
    r_nxt[:t_slots] = r_np[1:t_out]
    r_cur = jnp.asarray(r_cur, dtype=compute_dtype)
    r_nxt = jnp.asarray(r_nxt, dtype=compute_dtype)

    # ISTFT halves with the 1/sum(win^2) OLA envelope folded into the columns.
    w_l = jnp.asarray(w_ist_np[:, :HOP] * env_np[None, :], dtype=compute_dtype)
    w_r = jnp.asarray(w_ist_np[:, HOP:] * env_np[None, :], dtype=compute_dtype)

    cost = pl.CostEstimate(
        flops=b * rows_pad * (4 * n_frames * F2 + 4 * F2 * HOP),
        transcendentals=0,
        bytes_accessed=(2 * b * rows_pad * n_frames * isz   # R_cur + R_nxt per batch
                        + b * n_frames * F2 * isz           # spec (resident per batch)
                        + 2 * F2 * HOP * isz                # weights (resident)
                        + b * rows_pad * HOP * 4))          # f32 output

    y = pl.pallas_call(
        _resample_istft_ola_kernel,
        grid=(b, n_tj),                                     # slot tiles innermost:
        in_specs=[                                          # spec[b] stays resident
            pl.BlockSpec((g, n_frames), lambda bi, j: (j, 0)),
            pl.BlockSpec((g, n_frames), lambda bi, j: (j, 0)),
            pl.BlockSpec((None, n_frames, F2), lambda bi, j: (bi, 0, 0)),
            pl.BlockSpec((F2, HOP), lambda bi, j: (0, 0)),
            pl.BlockSpec((F2, HOP), lambda bi, j: (0, 0)),
        ],
        out_specs=pl.BlockSpec((None, g, HOP), lambda bi, j: (bi, j, 0)),
        out_shape=jax.ShapeDtypeStruct((b, rows_pad, HOP), jnp.float32),
        compiler_params=pltpu.CompilerParams(
            dimension_semantics=("parallel", "parallel"),
            vmem_limit_bytes=_VMEM_LIMIT),
        cost_estimate=cost,
    )(r_cur, r_nxt, spec, w_l, w_r)
    return y[:, :t_slots, :].reshape(b, t_slots * HOP)


# -------------------------- deterministic constants --------------------------

def _hann_window():
    n = np.arange(N_FFT, dtype=np.float64)
    return 0.5 - 0.5 * np.cos(2.0 * math.pi * n / N_FFT)   # periodic hann


def _stft_weight():
    """(N_FFT, 512) = [ win*cos | win*(-sin) ], each half zero-padded 201->256."""
    win = _hann_window()
    n = np.arange(N_FFT, dtype=np.float64)[:, None]
    k = np.arange(N_FREQ, dtype=np.float64)[None, :]
    ang = 2.0 * math.pi * n * k / N_FFT
    w = np.zeros((N_FFT, F2), dtype=np.float64)
    w[:, 0:N_FREQ] = win[:, None] * np.cos(ang)
    w[:, F_PAD:F_PAD + N_FREQ] = win[:, None] * (-np.sin(ang))
    return w


def _istft_weight():
    """(512, N_FFT): rows [cinv*win ; sinv*win] (201 each, zero-padded to 256)."""
    win = _hann_window()
    k = np.arange(N_FREQ, dtype=np.float64)[:, None]
    n = np.arange(N_FFT, dtype=np.float64)[None, :]
    ang = 2.0 * math.pi * k * n / N_FFT
    wk = np.where((k == 0) | (k == N_FFT // 2), 1.0, 2.0)
    cinv = (wk / N_FFT) * np.cos(ang)
    sinv = -(wk / N_FFT) * np.sin(ang)
    sinv[0, :] = 0.0                       # imag of DC / Nyquist ignored by irfft
    sinv[N_FFT // 2, :] = 0.0
    w = np.zeros((F2, N_FFT), dtype=np.float64)
    w[0:N_FREQ, :] = cinv * win[None, :]
    w[F_PAD:F_PAD + N_FREQ, :] = sinv * win[None, :]
    return w


def _ola_env_inv():
    """1 / (win^2[m] + win^2[m+HOP]) — exact OLA envelope of the retained
    (center-trimmed) samples at 50% overlap; periodic with period HOP."""
    win = _hann_window()
    env = win[:HOP] ** 2 + win[HOP:] ** 2
    return 1.0 / env


def _resample_matrix(orig_freq, new_freq, length,
                     lowpass_filter_width=6, rolloff=0.99):
    """Dense (t_out, length) band matrix equivalent to torchaudio's strided
    sinc_interp_hann conv1d resampler, built directly (no big intermediate)."""
    g = math.gcd(int(orig_freq), int(new_freq))
    orig = int(orig_freq) // g
    new = int(new_freq) // g
    base_freq = min(orig, new) * rolloff
    width = int(math.ceil(lowpass_filter_width * orig / base_freq))
    kw = 2 * width + orig
    idx = np.arange(-width, width + orig, dtype=np.float64) / orig
    t = np.arange(0, -new, -1, dtype=np.float64)[:, None] / new + idx[None, :]
    t *= base_freq
    t = np.clip(t, -lowpass_filter_width, lowpass_filter_width)
    hwin = np.cos(t * math.pi / lowpass_filter_width / 2.0) ** 2
    t *= math.pi
    kern = np.sinc(t / math.pi) * hwin * (base_freq / orig)      # (new, kw)

    target_len = int(math.ceil(new * length / orig))
    R = np.zeros((target_len, length), dtype=np.float64)
    n_conv = (length + 2 * width + orig - kw) // orig + 1
    for i in range(n_conv):
        r_lo = i * new
        if r_lo >= target_len:
            break
        r_hi = min(r_lo + new, target_len)
        c0 = i * orig - width
        c_lo = max(c0, 0)
        c_hi = min(c0 + kw, length)
        if c_hi <= c_lo:
            continue
        R[r_lo:r_hi, c_lo:c_hi] = kern[0:r_hi - r_lo, c_lo - c0:c_hi - c0]
    return R


# -------------------------------- forward pass --------------------------------

def dir_augmentation(waveform, target_resolution, *, compute_dtype=jnp.float32):
    waveform = jnp.asarray(waveform, jnp.float32)
    B, _ = waveform.shape
    cdt = jnp.dtype(compute_dtype)

    # ---- Spectrogram (complex STFT), center=True, reflect pad, onesided ----
    w_stft = jnp.asarray(_stft_weight(), dtype=cdt)                     # (400, 512)
    padded = jnp.pad(waveform, ((0, 0), (N_FFT // 2, N_FFT // 2)), mode="reflect")
    n_frames = 1 + (padded.shape[1] - N_FFT) // HOP
    usable = HOP * (n_frames + 1)
    segs = padded[:, :usable].reshape(B, n_frames + 1, HOP)
    # frame t = [segment t | segment t+1]  (hop = win/2)  -> reshape + concat, no gather.
    # TODO(synk): build frames inside the STFT kernel (two HOP-wide dots per tile)
    # to avoid this 2x-duplicated HBM copy of the audio (biggest on v5e/v6e).
    frames = jnp.concatenate([segs[:, :-1, :], segs[:, 1:, :]], axis=-1)
    frames2d = frames.reshape(B * n_frames, N_FFT).astype(cdt)
    spec2d = _tiled_rows_matmul(frames2d, w_stft, cdt)                  # (B*nf, 512)
    spec = spec2d.reshape(B, n_frames, F2)                              # (B, time, re|im)

    # ---- Resample(orig_freq=spectrogram.size(1)=N_FREQ, new_freq=target) + ISTFT + OLA ----
    r_np = _resample_matrix(N_FREQ, int(target_resolution), n_frames)
    if r_np.shape[0] < 2:
        raise ValueError("input too short: need >= 2 resampled frames for istft")
    # TODO(synk): for very long audio, exploit the band structure of r_np with
    # scalar-prefetched per-tile frame offsets instead of the dense matrix.
    return _resample_istft_ola(spec, r_np, _istft_weight(), _ola_env_inv(), cdt)


if __name__ == "__main__":
    key = jax.random.PRNGKey(0)
    B, T = 2, 2048
    target_resolution = 128
    waveform = jax.random.normal(key, (B, T), dtype=jnp.float32)

    out = dir_augmentation(waveform, target_resolution)
    out = jax.block_until_ready(out)
    assert out.shape[0] == B and out.ndim == 2
    assert bool(jnp.all(jnp.isfinite(out)))
    print("KERNEL_OK")
</pallas_src>

<mosaic_0001>
module attributes {stable_mosaic.version = 11 : i64} {
  func.func @_rows_matmul_kernel(%arg0: i32, %arg1: memref<22x400xf32, #tpu.memory_space<vmem>>, %arg2: memref<400x512xf32, #tpu.memory_space<vmem>>, %arg3: memref<22x512xf32, #tpu.memory_space<vmem>>) attributes {dimension_semantics = [#tpu.dimension_semantics<parallel>], iteration_bounds = array<i64: 1>, scalar_prefetch = 0 : i64, scratch_operands = 0 : i64, tpu.core_type = #tpu.core_type<tc>, window_params = [{transform_indices = @transform_0, window_bounds = array<i64: 22, 400>}, {pipeline_mode = #tpu.pipeline_mode<synchronous>, transform_indices = @transform_1, window_bounds = array<i64: 400, 512>}, {transform_indices = @transform_2, window_bounds = array<i64: 22, 512>}]} {
    %c0 = arith.constant 0 : index
    %c0_0 = arith.constant 0 : index
    %0 = vector.load %arg1[%c0, %c0_0] : memref<22x400xf32, #tpu.memory_space<vmem>>, vector<22x400xf32>
    %c0_1 = arith.constant 0 : index
    %c0_2 = arith.constant 0 : index
    %1 = vector.load %arg2[%c0_1, %c0_2] : memref<400x512xf32, #tpu.memory_space<vmem>>, vector<400x512xf32>
    %cst = arith.constant dense<0.000000e+00> : vector<22x512xf32>
    %2 = tpu.matmul %0, %1, %cst {dimension_numbers = #tpu.dot_dimension_numbers<[1], [0], [0], [1], [0, 0, 1, 1], [], []>} : vector<22x400xf32>, vector<400x512xf32>, vector<22x512xf32> -> vector<22x512xf32>
    %c0_3 = arith.constant 0 : index
    %c0_4 = arith.constant 0 : index
    %3 = vector.load %arg3[%c0_3, %c0_4] : memref<22x512xf32, #tpu.memory_space<vmem>>, vector<22x512xf32>
    tpu.vector_store %arg3[%c0_3, %c0_4], %2 {strides = array<i32>} : memref<22x512xf32, #tpu.memory_space<vmem>>, vector<22x512xf32>,
    return
  }
  func.func @transform_0(%arg0: i32) -> (i32, i32) {
    %c0_i32 = arith.constant 0 : i32
    %c0_i32_0 = arith.constant 0 : i32
    return %arg0, %c0_i32 : i32, i32
  }
  func.func @transform_1(%arg0: i32) -> (i32, i32) {
    %c0_i32 = arith.constant 0 : i32
    %c0_i32_0 = arith.constant 0 : i32
    %c0_i32_1 = arith.constant 0 : i32
    return %c0_i32, %c0_i32_0 : i32, i32
  }
  func.func @transform_2(%arg0: i32) -> (i32, i32) {
    %c0_i32 = arith.constant 0 : i32
    %c0_i32_0 = arith.constant 0 : i32
    return %arg0, %c0_i32 : i32, i32
  }
}

</mosaic_0001>

<bundles_post_ra>
// kernel: tpu_custom_call.1
= control target key start
LH: loop header
LB: loop body
LE: loop exit
PB: predicated region body
PF: predicated region fallthrough
CT: control target
= control target key end

     0   :  { %7 = vsyncpa [#allocation3], 0  ;;  %s769_s0 = inlined_call_operand.hbm [shape: f32[22,400], index: 0, kind: input, shape index: {}]   ;;  %s770_s1 = inlined_call_operand.hbm [shape: f32[400,512], index: 1, kind: input, shape index: {}]   ;;  %s771_s2 = inlined_call_operand.hbm [shape: f32[22,512], index: 2, kind: output, shape index: {}]  }
   0x1   :  { %8 = vsyncpa [#allocation6], 0 }
   0x2   :  { %9 = vsyncpa [#allocation4], 0  ;;  %s701_s9 = smov [#allocation2]  }
   0x3   :  { %s15_s10 = sshll.u32 %s701_s9, 4  ;;  %s16_s10 = int_to_ptr.vmem [resolvable:$true] %s15_s10 }
   0x4   :  { %s643_s11 = scalar_lea.vmem %s16_s10, 1536  ;;  %p648_p1 = scmp.lt.s32.totalorder %s16_s10, %s16_s10 }
   0x5   :  { %p644_p0 = scmp.ne.s32.totalorder %s16_s10, %s643_s11  ;;  %p649_p2 = scmp.lt.s32.totalorder %s643_s11, %s643_s11 }
   0x7   :  { %p650_p3 = por %p649_p2, %p648_p1 }
   0x9   :  { %p651_p4 = pnand %p650_p3, %p644_p0 }
   0xb   :  { %654 = shalt.err (!%p651_p4)
}
   0xc   :  { %s702_s12 = smov 512   ;;  %s703_s13 = smov 32  }
   0xd   :  { %21 = dma.hbm_to_vmem [thread:$0]  %s769_s0, 1536, %s16_s10, [#allocation3], %s702_s12, %s702_s12, %s703_s13  }
   0xe   :  { %s704_s16 = smov [#allocation5]  }
   0xf   :  { %s27_s17 = sshll.u32 %s704_s16, 4  ;;  %s28_s17 = int_to_ptr.vmem [resolvable:$true] %s27_s17 }
  0x10   :  { %s663_s18 = scalar_lea.vmem %s28_s17, 25600  ;;  %p668_p6 = scmp.lt.s32.totalorder %s28_s17, %s28_s17 }
  0x11   :  { %p664_p5 = scmp.ne.s32.totalorder %s28_s17, %s663_s18  ;;  %p669_p7 = scmp.lt.s32.totalorder %s663_s18, %s663_s18 }
  0x13   :  { %p670_p8 = por %p669_p7, %p668_p6 }
  0x15   :  { %p671_p9 = pnand %p670_p8, %p664_p5 }
  0x17   :  { %674 = shalt.err (!%p671_p9)
}
  0x18   :  { %33 = dma.hbm_to_vmem [thread:$0]  %s770_s1, 25600, %s28_s17, [#allocation6], %s702_s12, %s702_s12, %s703_s13  }
  0x19   :  { %695 = dma.done.wait [#allocation3], 1536  }
  0x1a   :  { %696 = vsyncadd [#allocation3], 4294965760 }
  0x1b   :  { %697 = dma.done.wait [#allocation6], 25600  }
  0x1c   :  { %698 = vsyncadd [#allocation6], 4294941696  ;;  %v113_v0 = vld [vmem:[#allocation5 + $0x1e8] sm:$0xff]  ;;  %v112_v2 = vld [vmem:[#allocation5 + $0x1e0] sm:$0xff]  ;;  %vm252_vm0 = vcmask 130048   ;;  %s705_s0 = smov [#allocation7]  }
  0x1d   :  { %v241_v1 = vld [vmem:[#allocation5 + $0x5e8] sm:$0xff]  ;;  %262 = vmatprep.subr.mxu0 %v113_v0  ;;  %v240_v3 = vld [vmem:[#allocation5 + $0x5e0] sm:$0xff]  ;;  %s611_s1 = sshll.u32 %s705_s0, 4  ;;  %s612_s1 = int_to_ptr.vmem [resolvable:$true] %s611_s1 }
  0x1e   :  { %345 = vmatprep.subr.mxu1 %v241_v1  ;;  %v109_v4 = vld [vmem:[#allocation5 + $0x1c8] sm:$0xff]  ;;  %263 = vmatpush1.msra.mxu0 %v112_v2  ;;  %v108_v6 = vld [vmem:[#allocation5 + $0x1c0] sm:$0xff]  ;;  %s675_s21 = scalar_lea.vmem %s612_s1, 1536  ;;  %p680_p11 = scmp.lt.s32.totalorder %s612_s1, %s612_s1 }
  0x1f   :  { %v237_v5 = vld [vmem:[#allocation5 + $0x5c8] sm:$0xff]  ;;  %346 = vmatpush1.msra.mxu1 %v240_v3  ;;  %v236_v7 = vld [vmem:[#allocation5 + $0x5c0] sm:$0xff]  ;;  %264 = vmatprep.subr.mxu0 %v109_v4  ;;  %p676_p10 = scmp.ne.s32.totalorder %s612_s1, %s675_s21  ;;  %p681_p12 = scmp.lt.s32.totalorder %s675_s21, %s675_s21 }
  0x20   :  { %v105_v8 = vld [vmem:[#allocation5 + $0x1a8] sm:$0xff]  ;;  %347 = vmatprep.subr.mxu1 %v237_v5  ;;  %v104_v10 = vld [vmem:[#allocation5 + $0x1a0] sm:$0xff]  ;;  %265 = vmatpush1.msra.mxu0 %v108_v6 }
  0x21   :  { %v233_v9 = vld [vmem:[#allocation5 + $0x5a8] sm:$0xff]  ;;  %v232_v11 = vld [vmem:[#allocation5 + $0x5a0] sm:$0xff]  ;;  %348 = vmatpush1.msra.mxu1 %v236_v7  ;;  %266 = vmatprep.subr.mxu0 %v105_v8  ;;  %v733_v8 = vld [vmem:[#allocation2 + $0x18] sm:$0xff]  ;;  %p682_p13 = por %p681_p12, %p680_p11 }
  0x22   :  { %v101_v12 = vld [vmem:[#allocation5 + $0x188] sm:$0xff]  ;;  %349 = vmatprep.subr.mxu1 %v233_v9  ;;  %v100_v14 = vld [vmem:[#allocation5 + $0x180] sm:$0xff]  ;;  %267 = vmatpush1.msra.mxu0 %v104_v10  ;;  %v735_v10 = vld [vmem:[#allocation2 + $0x10] sm:$0xff] }
  0x23   :  { %v229_v13 = vld [vmem:[#allocation5 + $0x588] sm:$0xff]  ;;  %v228_v15 = vld [vmem:[#allocation5 + $0x580] sm:$0xff]  ;;  %350 = vmatpush1.msra.mxu1 %v232_v11  ;;  %268 = vmatprep.subr.mxu0 %v101_v12  ;;  %v115_v11 = vld [vmem:[#allocation5 + $0x1f8] sm:$0xff]  ;;  %p683_p0 = pnand %p682_p13, %p676_p10 }
  0x24   :  { %v97_v16 = vld [vmem:[#allocation5 + $0x168] sm:$0xff]  ;;  %351 = vmatprep.subr.mxu1 %v229_v13  ;;  %v96_v18 = vld [vmem:[#allocation5 + $0x160] sm:$0xff]  ;;  %269 = vmatpush1.msra.mxu0 %v100_v14  ;;  %v114_v13 = vld [vmem:[#allocation5 + $0x1f0] sm:$0xff] }
  0x25   :  { %v225_v17 = vld [vmem:[#allocation5 + $0x568] sm:$0xff]  ;;  %v224_v19 = vld [vmem:[#allocation5 + $0x560] sm:$0xff]  ;;  %352 = vmatpush1.msra.mxu1 %v228_v15  ;;  %270 = vmatprep.subr.mxu0 %v97_v16  ;;  %v111_v15 = vld [vmem:[#allocation5 + $0x1d8] sm:$0xff] }
  0x26   :  { %v93_v20 = vld [vmem:[#allocation5 + $0x148] sm:$0xff]  ;;  %353 = vmatprep.subr.mxu1 %v225_v17  ;;  %v92_v22 = vld [vmem:[#allocation5 + $0x140] sm:$0xff]  ;;  %271 = vmatpush1.msra.mxu0 %v96_v18  ;;  %v110_v17 = vld [vmem:[#allocation5 + $0x1d0] sm:$0xff] }
  0x27   :  { %v221_v21 = vld [vmem:[#allocation5 + $0x548] sm:$0xff]  ;;  %v220_v23 = vld [vmem:[#allocation5 + $0x540] sm:$0xff]  ;;  %354 = vmatpush1.msra.mxu1 %v224_v19  ;;  %272 = vmatprep.subr.mxu0 %v93_v20  ;;  %v107_v19 = vld [vmem:[#allocation5 + $0x1b8] sm:$0xff] }
  0x28   :  { %v89_v24 = vld [vmem:[#allocation5 + $0x128] sm:$0xff]  ;;  %355 = vmatprep.subr.mxu1 %v221_v21  ;;  %v88_v26 = vld [vmem:[#allocation5 + $0x120] sm:$0xff]  ;;  %273 = vmatpush1.msra.mxu0 %v92_v22  ;;  %v106_v21 = vld [vmem:[#allocation5 + $0x1b0] sm:$0xff] }
  0x29   :  { %v217_v25 = vld [vmem:[#allocation5 + $0x528] sm:$0xff]  ;;  %v216_v27 = vld [vmem:[#allocation5 + $0x520] sm:$0xff]  ;;  %356 = vmatpush1.msra.mxu1 %v220_v23  ;;  %274 = vmatprep.subr.mxu0 %v89_v24  ;;  %v103_v23 = vld [vmem:[#allocation5 + $0x198] sm:$0xff] }
  0x2a   :  { %v85_v28 = vld [vmem:[#allocation5 + $0x108] sm:$0xff]  ;;  %357 = vmatprep.subr.mxu1 %v217_v25  ;;  %v84_v30 = vld [vmem:[#allocation5 + $0x100] sm:$0xff]  ;;  %275 = vmatpush1.msra.mxu0 %v88_v26  ;;  %v102_v25 = vld [vmem:[#allocation5 + $0x190] sm:$0xff] }
  0x2b   :  { %v213_v29 = vld [vmem:[#allocation5 + $0x508] sm:$0xff]  ;;  %v212_v31 = vld [vmem:[#allocation5 + $0x500] sm:$0xff]  ;;  %358 = vmatpush1.msra.mxu1 %v216_v27  ;;  %276 = vmatprep.subr.mxu0 %v85_v28  ;;  %v99_v27 = vld [vmem:[#allocation5 + $0x178] sm:$0xff] }
  0x2c   :  { %v81_v32 = vld [vmem:[#allocation5 + $0xe8] sm:$0xff]  ;;  %359 = vmatprep.subr.mxu1 %v213_v29  ;;  %v80_v34 = vld [vmem:[#allocation5 + $0xe0] sm:$0xff]  ;;  %277 = vmatpush1.msra.mxu0 %v84_v30  ;;  %v98_v29 = vld [vmem:[#allocation5 + $0x170] sm:$0xff] }
  0x2d   :  { %v209_v33 = vld [vmem:[#allocation5 + $0x4e8] sm:$0xff]  ;;  %v208_v35 = vld [vmem:[#allocation5 + $0x4e0] sm:$0xff]  ;;  %360 = vmatpush1.msra.mxu1 %v212_v31  ;;  %278 = vmatprep.subr.mxu0 %v81_v32  ;;  %v95_v31 = vld [vmem:[#allocation5 + $0x158] sm:$0xff] }
  0x2e   :  { %v77_v36 = vld [vmem:[#allocation5 + $0xc8] sm:$0xff]  ;;  %361 = vmatprep.subr.mxu1 %v209_v33  ;;  %v76_v38 = vld [vmem:[#allocation5 + $0xc0] sm:$0xff]  ;;  %279 = vmatpush1.msra.mxu0 %v80_v34  ;;  %v94_v33 = vld [vmem:[#allocation5 + $0x150] sm:$0xff] }
  0x2f   :  { %v205_v37 = vld [vmem:[#allocation5 + $0x4c8] sm:$0xff]  ;;  %v204_v39 = vld [vmem:[#allocation5 + $0x4c0] sm:$0xff]  ;;  %362 = vmatpush1.msra.mxu1 %v208_v35  ;;  %280 = vmatprep.subr.mxu0 %v77_v36  ;;  %v91_v35 = vld [vmem:[#allocation5 + $0x138] sm:$0xff] }
  0x30   :  { %v73_v40 = vld [vmem:[#allocation5 + $0xa8] sm:$0xff]  ;;  %363 = vmatprep.subr.mxu1 %v205_v37  ;;  %v72_v42 = vld [vmem:[#allocation5 + $0xa0] sm:$0xff]  ;;  %281 = vmatpush1.msra.mxu0 %v76_v38  ;;  %v90_v37 = vld [vmem:[#allocation5 + $0x130] sm:$0xff] }
  0x31   :  { %v201_v41 = vld [vmem:[#allocation5 + $0x4a8] sm:$0xff]  ;;  %v200_v43 = vld [vmem:[#allocation5 + $0x4a0] sm:$0xff]  ;;  %364 = vmatpush1.msra.mxu1 %v204_v39  ;;  %282 = vmatprep.subr.mxu0 %v73_v40  ;;  %v87_v39 = vld [vmem:[#allocation5 + $0x118] sm:$0xff] }
  0x32   :  { %v69_v44 = vld [vmem:[#allocation5 + $0x88] sm:$0xff]  ;;  %365 = vmatprep.subr.mxu1 %v201_v41  ;;  %v68_v46 = vld [vmem:[#allocation5 + $0x80] sm:$0xff]  ;;  %283 = vmatpush1.msra.mxu0 %v72_v42  ;;  %v86_v41 = vld [vmem:[#allocation5 + $0x110] sm:$0xff] }
  0x33   :  { %v197_v45 = vld [vmem:[#allocation5 + $0x488] sm:$0xff]  ;;  %v196_v47 = vld [vmem:[#allocation5 + $0x480] sm:$0xff]  ;;  %366 = vmatpush1.msra.mxu1 %v200_v43  ;;  %284 = vmatprep.subr.mxu0 %v69_v44  ;;  %v83_v43 = vld [vmem:[#allocation5 + $0xf8] sm:$0xff] }
  0x34   :  { %v65_v48 = vld [vmem:[#allocation5 + $0x68] sm:$0xff]  ;;  %367 = vmatprep.subr.mxu1 %v197_v45  ;;  %v64_v50 = vld [vmem:[#allocation5 + $0x60] sm:$0xff]  ;;  %285 = vmatpush1.msra.mxu0 %v68_v46  ;;  %v82_v45 = vld [vmem:[#allocation5 + $0xf0] sm:$0xff] }
  0x35   :  { %v193_v49 = vld [vmem:[#allocation5 + $0x468] sm:$0xff]  ;;  %v192_v51 = vld [vmem:[#allocation5 + $0x460] sm:$0xff]  ;;  %368 = vmatpush1.msra.mxu1 %v196_v47  ;;  %286 = vmatprep.subr.mxu0 %v65_v48  ;;  %v79_v47 = vld [vmem:[#allocation5 + $0xd8] sm:$0xff] }
  0x36   :  { %v61_v52 = vld [vmem:[#allocation5 + $0x48] sm:$0xff]  ;;  %369 = vmatprep.subr.mxu1 %v193_v49  ;;  %v60_v54 = vld [vmem:[#allocation5 + $0x40] sm:$0xff]  ;;  %287 = vmatpush1.msra.mxu0 %v64_v50  ;;  %v78_v49 = vld [vmem:[#allocation5 + $0xd0] sm:$0xff] }
  0x37   :  { %v189_v53 = vld [vmem:[#allocation5 + $0x448] sm:$0xff]  ;;  %v188_v55 = vld [vmem:[#allocation5 + $0x440] sm:$0xff]  ;;  %370 = vmatpush1.msra.mxu1 %v192_v51  ;;  %288 = vmatprep.subr.mxu0 %v61_v52  ;;  %v75_v51 = vld [vmem:[#allocation5 + $0xb8] sm:$0xff] }
  0x38   :  { %v57_v56 = vld [vmem:[#allocation5 + $0x28] sm:$0xff]  ;;  %371 = vmatprep.subr.mxu1 %v189_v53  ;;  %v56_v58 = vld [vmem:[#allocation5 + $0x20] sm:$0xff]  ;;  %289 = vmatpush1.msra.mxu0 %v60_v54  ;;  %v74_v53 = vld [vmem:[#allocation5 + $0xb0] sm:$0xff] }
  0x39   :  { %v185_v57 = vld [vmem:[#allocation5 + $0x428] sm:$0xff]  ;;  %v184_v59 = vld [vmem:[#allocation5 + $0x420] sm:$0xff]  ;;  %372 = vmatpush1.msra.mxu1 %v188_v55  ;;  %290 = vmatprep.subr.mxu0 %v57_v56  ;;  %v71_v55 = vld [vmem:[#allocation5 + $0x98] sm:$0xff] }
  0x3a   :  { %v53_v60 = vld [vmem:[#allocation5 + $0x8] sm:$0xff]  ;;  %373 = vmatprep.subr.mxu1 %v185_v57  ;;  %v52_v62 = vld [vmem:[#allocation5] sm:$0xff]  ;;  %291 = vmatpush1.msra.mxu0 %v56_v58  ;;  %v70_v57 = vld [vmem:[#allocation5 + $0x90] sm:$0xff] }
  0x3b   :  { %v181_v61 = vld [vmem:[#allocation5 + $0x408] sm:$0xff]  ;;  %v180_v63 = vld [vmem:[#allocation5 + $0x400] sm:$0xff]  ;;  %374 = vmatpush1.msra.mxu1 %v184_v59  ;;  %292 = vmatprep.subr.mxu0 %v53_v60  ;;  %v67_v59 = vld [vmem:[#allocation5 + $0x78] sm:$0xff] }
  0x3c   :  { %v177_v0 = vld [vmem:[#allocation5 + $0x3e8] sm:$0xff]  ;;  %375 = vmatprep.subr.mxu1 %v181_v61  ;;  %v176_v2 = vld [vmem:[#allocation5 + $0x3e0] sm:$0xff]  ;;  %293 = vmatpush1.msra.mxu0 %v52_v62  ;;  %v66_v61 = vld [vmem:[#allocation5 + $0x70] sm:$0xff] }
  0x3d   :  { %v249_v1 = vld [vmem:[#allocation5 + $0x628] sm:$0xff]  ;;  %v248_v3 = vld [vmem:[#allocation5 + $0x620] sm:$0xff]  ;;  %376 = vmatpush1.msra.mxu1 %v180_v63  ;;  %294 = vmatprep.subr.mxu0 %v177_v0  ;;  %v63_v63 = vld [vmem:[#allocation5 + $0x58] sm:$0xff] }
  0x3e   :  { %v173_v4 = vld [vmem:[#allocation5 + $0x3c8] sm:$0xff]  ;;  %405 = vmatprep.subr.mxu1 %v249_v1  ;;  %v172_v6 = vld [vmem:[#allocation5 + $0x3c0] sm:$0xff]  ;;  %295 = vmatpush2.msra.mxu0 %v176_v2  ;;  %v62_v2 = vld [vmem:[#allocation5 + $0x50] sm:$0xff] }
  0x3f   :  { %v245_v5 = vld [vmem:[#allocation5 + $0x608] sm:$0xff]  ;;  %v244_v7 = vld [vmem:[#allocation5 + $0x600] sm:$0xff]  ;;  %406 = vmatpush2.msra.mxu1 %v248_v3  ;;  %296 = vmatprep.subr.mxu0 %v173_v4  ;;  %v59_v4 = vld [vmem:[#allocation5 + $0x38] sm:$0xff] }
  0x40   :  { %v169_v9 = vld [vmem:[#allocation5 + $0x3a8] sm:$0xff]  ;;  %407 = vmatprep.subr.mxu1 %v245_v5  ;;  %297 = vmatpush2.msra.mxu0 %v172_v6  ;;  %v168_v12 = vld [vmem:[#allocation5 + $0x3a0] sm:$0xff]  ;;  %v243_v5 = vld [vmem:[#allocation5 + $0x5f8] sm:$0xff] }
  0x41   :  { %408 = vmatpush2.msra.mxu1 %v244_v7  ;;  %624 = vmatprep.mubr.msk.f32.mxu1 %vm252_vm0, %v733_v8  ;;  %v165_v14 = vld [vmem:[#allocation5 + $0x388] sm:$0xff]  ;;  %v164_v16 = vld [vmem:[#allocation5 + $0x380] sm:$0xff]  ;;  %v58_v6 = vld [vmem:[#allocation5 + $0x30] sm:$0xff] }
  0x42   :  { %298 = vmatprep.subr.mxu0 %v169_v9  ;;  %410 = vmatmul.mubr.f32.vlgmr.msra.gmra.mxu1 %v735_v10  ;;  %v161_v18 = vld [vmem:[#allocation5 + $0x368] sm:$0xff]  ;;  %v160_v20 = vld [vmem:[#allocation5 + $0x360] sm:$0xff]  ;;  %v242_v7 = vld [vmem:[#allocation5 + $0x5f0] sm:$0xff] }
  0x43   :  { %428 = vmatprep.subr.mxu1 %v115_v11  ;;  %299 = vmatpush2.msra.mxu0 %v168_v12  ;;  %v157_v22 = vld [vmem:[#allocation5 + $0x348] sm:$0xff]  ;;  %v156_v24 = vld [vmem:[#allocation5 + $0x340] sm:$0xff]  ;;  %v55_v9 = vld [vmem:[#allocation5 + $0x18] sm:$0xff] }
  0x44   :  { %429 = vmatpush1.msra.mxu1 %v114_v13  ;;  %300 = vmatprep.subr.mxu0 %v165_v14  ;;  %v153_v26 = vld [vmem:[#allocation5 + $0x328] sm:$0xff]  ;;  %v152_v28 = vld [vmem:[#allocation5 + $0x320] sm:$0xff]  ;;  %v239_v11 = vld [vmem:[#allocation5 + $0x5d8] sm:$0xff] }
  0x45   :  { %430 = vmatprep.subr.mxu1 %v111_v15  ;;  %301 = vmatpush2.msra.mxu0 %v164_v16  ;;  %v149_v30 = vld [vmem:[#allocation5 + $0x308] sm:$0xff]  ;;  %v148_v32 = vld [vmem:[#allocation5 + $0x300] sm:$0xff]  ;;  %v54_v12 = vld [vmem:[#allocation5 + $0x10] sm:$0xff] }
  0x46   :  { %431 = vmatpush1.msra.mxu1 %v110_v17  ;;  %302 = vmatprep.subr.mxu0 %v161_v18  ;;  %v145_v34 = vld [vmem:[#allocation5 + $0x2e8] sm:$0xff]  ;;  %v144_v36 = vld [vmem:[#allocation5 + $0x2e0] sm:$0xff]  ;;  %v238_v13 = vld [vmem:[#allocation5 + $0x5d0] sm:$0xff] }
  0x47   :  { %432 = vmatprep.subr.mxu1 %v107_v19  ;;  %303 = vmatpush2.msra.mxu0 %v160_v20  ;;  %v141_v38 = vld [vmem:[#allocation5 + $0x2c8] sm:$0xff]  ;;  %v140_v40 = vld [vmem:[#allocation5 + $0x2c0] sm:$0xff]  ;;  %v179_v14 = vld [vmem:[#allocation5 + $0x3f8] sm:$0xff] }
  0x48   :  { %433 = vmatpush1.msra.mxu1 %v106_v21  ;;  %304 = vmatprep.subr.mxu0 %v157_v22  ;;  %v137_v42 = vld [vmem:[#allocation5 + $0x2a8] sm:$0xff]  ;;  %v136_v44 = vld [vmem:[#allocation5 + $0x2a0] sm:$0xff]  ;;  %v235_v15 = vld [vmem:[#allocation5 + $0x5b8] sm:$0xff] }
  0x49   :  { %434 = vmatprep.subr.mxu1 %v103_v23  ;;  %305 = vmatpush2.msra.mxu0 %v156_v24  ;;  %v133_v46 = vld [vmem:[#allocation5 + $0x288] sm:$0xff]  ;;  %v132_v48 = vld [vmem:[#allocation5 + $0x280] sm:$0xff]  ;;  %v178_v16 = vld [vmem:[#allocation5 + $0x3f0] sm:$0xff] }
  0x4a   :  { %435 = vmatpush1.msra.mxu1 %v102_v25  ;;  %306 = vmatprep.subr.mxu0 %v153_v26  ;;  %v129_v50 = vld [vmem:[#allocation5 + $0x268] sm:$0xff]  ;;  %v128_v52 = vld [vmem:[#allocation5 + $0x260] sm:$0xff]  ;;  %v234_v17 = vld [vmem:[#allocation5 + $0x5b0] sm:$0xff] }
  0x4b   :  { %436 = vmatprep.subr.mxu1 %v99_v27  ;;  %307 = vmatpush2.msra.mxu0 %v152_v28  ;;  %v125_v54 = vld [vmem:[#allocation5 + $0x248] sm:$0xff]  ;;  %v124_v56 = vld [vmem:[#allocation5 + $0x240] sm:$0xff]  ;;  %v175_v18 = vld [vmem:[#allocation5 + $0x3d8] sm:$0xff] }
  0x4c   :  { %437 = vmatpush1.msra.mxu1 %v98_v29  ;;  %308 = vmatprep.subr.mxu0 %v149_v30  ;;  %v121_v58 = vld [vmem:[#allocation5 + $0x228] sm:$0xff]  ;;  %v120_v60 = vld [vmem:[#allocation5 + $0x220] sm:$0xff]  ;;  %v231_v19 = vld [vmem:[#allocation5 + $0x598] sm:$0xff] }
  0x4d   :  { %438 = vmatprep.subr.mxu1 %v95_v31  ;;  %309 = vmatpush2.msra.mxu0 %v148_v32  ;;  %v117_v62 = vld [vmem:[#allocation5 + $0x208] sm:$0xff]  ;;  %v116_v0 = vld [vmem:[#allocation5 + $0x200] sm:$0xff]  ;;  %v174_v20 = vld [vmem:[#allocation5 + $0x3d0] sm:$0xff] }
  0x4e   :  { %439 = vmatpush1.msra.mxu1 %v94_v33  ;;  %310 = vmatprep.subr.mxu0 %v145_v34  ;;  %v740_v1 = vld [vmem:[#allocation2 + $0x8] sm:$0xff]  ;;  %v742_v3 = vld [vmem:[#allocation2] sm:$0xff]  ;;  %v230_v21 = vld [vmem:[#allocation5 + $0x590] sm:$0xff] }
  0x4f   :  { %440 = vmatprep.subr.mxu1 %v91_v35  ;;  %311 = vmatpush2.msra.mxu0 %v144_v36  ;;  %v171_v22 = vld [vmem:[#allocation5 + $0x3b8] sm:$0xff]  ;;  %v170_v24 = vld [vmem:[#allocation5 + $0x3b0] sm:$0xff] }
  0x50   :  { %441 = vmatpush1.msra.mxu1 %v90_v37  ;;  %312 = vmatprep.subr.mxu0 %v141_v38  ;;  %v227_v23 = vld [vmem:[#allocation5 + $0x578] sm:$0xff]  ;;  %v226_v25 = vld [vmem:[#allocation5 + $0x570] sm:$0xff] }
  0x51   :  { %442 = vmatprep.subr.mxu1 %v87_v39  ;;  %313 = vmatpush2.msra.mxu0 %v140_v40  ;;  %v167_v26 = vld [vmem:[#allocation5 + $0x398] sm:$0xff]  ;;  %v166_v28 = vld [vmem:[#allocation5 + $0x390] sm:$0xff] }
  0x52   :  { %443 = vmatpush1.msra.mxu1 %v86_v41  ;;  %314 = vmatprep.subr.mxu0 %v137_v42  ;;  %v223_v27 = vld [vmem:[#allocation5 + $0x558] sm:$0xff]  ;;  %v222_v29 = vld [vmem:[#allocation5 + $0x550] sm:$0xff] }
  0x53   :  { %444 = vmatprep.subr.mxu1 %v83_v43  ;;  %315 = vmatpush2.msra.mxu0 %v136_v44  ;;  %v163_v30 = vld [vmem:[#allocation5 + $0x378] sm:$0xff]  ;;  %v162_v32 = vld [vmem:[#allocation5 + $0x370] sm:$0xff] }
  0x54   :  { %445 = vmatpush1.msra.mxu1 %v82_v45  ;;  %316 = vmatprep.subr.mxu0 %v133_v46  ;;  %v219_v31 = vld [vmem:[#allocation5 + $0x538] sm:$0xff]  ;;  %v218_v33 = vld [vmem:[#allocation5 + $0x530] sm:$0xff] }
  0x55   :  { %446 = vmatprep.subr.mxu1 %v79_v47  ;;  %317 = vmatpush2.msra.mxu0 %v132_v48  ;;  %v159_v34 = vld [vmem:[#allocation5 + $0x358] sm:$0xff]  ;;  %v158_v36 = vld [vmem:[#allocation5 + $0x350] sm:$0xff] }
  0x56   :  { %447 = vmatpush1.msra.mxu1 %v78_v49  ;;  %318 = vmatprep.subr.mxu0 %v129_v50  ;;  %v215_v35 = vld [vmem:[#allocation5 + $0x518] sm:$0xff]  ;;  %v214_v37 = vld [vmem:[#allocation5 + $0x510] sm:$0xff] }
  0x57   :  { %448 = vmatprep.subr.mxu1 %v75_v51  ;;  %319 = vmatpush2.msra.mxu0 %v128_v52  ;;  %v155_v38 = vld [vmem:[#allocation5 + $0x338] sm:$0xff]  ;;  %v154_v40 = vld [vmem:[#allocation5 + $0x330] sm:$0xff] }
  0x58   :  { %449 = vmatpush1.msra.mxu1 %v74_v53  ;;  %320 = vmatprep.subr.mxu0 %v125_v54  ;;  %v211_v39 = vld [vmem:[#allocation5 + $0x4f8] sm:$0xff]  ;;  %v210_v41 = vld [vmem:[#allocation5 + $0x4f0] sm:$0xff] }
  0x59   :  { %450 = vmatprep.subr.mxu1 %v71_v55  ;;  %321 = vmatpush2.msra.mxu0 %v124_v56  ;;  %v151_v42 = vld [vmem:[#allocation5 + $0x318] sm:$0xff]  ;;  %v150_v44 = vld [vmem:[#allocation5 + $0x310] sm:$0xff]  ;;  %v746_v56 = vld [vmem:[#allocation2 + $0x28] sm:$0xff] }
  0x5a   :  { %451 = vmatpush1.msra.mxu1 %v70_v57  ;;  %322 = vmatprep.subr.mxu0 %v121_v58  ;;  %v207_v43 = vld [vmem:[#allocation5 + $0x4d8] sm:$0xff]  ;;  %v206_v45 = vld [vmem:[#allocation5 + $0x4d0] sm:$0xff] }
  0x5b   :  { %452 = vmatprep.subr.mxu1 %v67_v59  ;;  %323 = vmatpush2.msra.mxu0 %v120_v60  ;;  %v147_v46 = vld [vmem:[#allocation5 + $0x2f8] sm:$0xff]  ;;  %v146_v48 = vld [vmem:[#allocation5 + $0x2f0] sm:$0xff]  ;;  %v44_v60 = vld [vmem:[#allocation2 + $0x20] sm:$0xff] }
  0x5c   :  { %453 = vmatpush1.msra.mxu1 %v66_v61  ;;  %324 = vmatprep.subr.mxu0 %v117_v62  ;;  %v203_v47 = vld [vmem:[#allocation5 + $0x4b8] sm:$0xff]  ;;  %v202_v49 = vld [vmem:[#allocation5 + $0x4b0] sm:$0xff] }
  0x5d   :  { %454 = vmatprep.subr.mxu1 %v63_v63  ;;  %325 = vmatpush2.msra.mxu0 %v116_v0  ;;  %v143_v50 = vld [vmem:[#allocation5 + $0x2d8] sm:$0xff]  ;;  %v142_v52 = vld [vmem:[#allocation5 + $0x2d0] sm:$0xff] }
  0x5e   :  { %326 = vmatprep.mubr.f32.mxu0 %v740_v1  ;;  %455 = vmatpush1.msra.mxu1 %v62_v2  ;;  %v199_v51 = vld [vmem:[#allocation5 + $0x498] sm:$0xff]  ;;  %v198_v53 = vld [vmem:[#allocation5 + $0x490] sm:$0xff] }
  0x5f   :  { %327 = vmatmul.mubr.f32.vlgmr.msra.gmra.mxu0 %v742_v3  ;;  %456 = vmatprep.subr.mxu1 %v59_v4  ;;  %v139_v54 = vld [vmem:[#allocation5 + $0x2b8] sm:$0xff]  ;;  %v138_v58 = vld [vmem:[#allocation5 + $0x2b0] sm:$0xff] }
  0x60   :  { %511 = vmatprep.subr.mxu0 %v243_v5  ;;  %457 = vmatpush1.msra.mxu1 %v58_v6  ;;  %v195_v55 = vld [vmem:[#allocation5 + $0x478] sm:$0xff]  ;;  %v194_v59 = vld [vmem:[#allocation5 + $0x470] sm:$0xff]  ;;  %v49_v6 = vld [vmem:[#allocation2 + $0x48] sm:$0x3f] }
  0x61   :  { %512 = vmatpush1.msra.mxu0 %v242_v7  ;;  %458 = vmatprep.subr.mxu1 %v55_v9  ;;  %v748_v57 = vld [vmem:[#allocation2 + $0x38] sm:$0xff]  ;;  %v46_v61 = vld [vmem:[#allocation2 + $0x30] sm:$0xff] }
  0x62   :  { %513 = vmatprep.subr.mxu0 %v239_v11  ;;  %459 = vmatpush1.msra.mxu1 %v54_v12  ;;  %v135_v62 = vld [vmem:[#allocation5 + $0x298] sm:$0xff]  ;;  %v134_v0 = vld [vmem:[#allocation5 + $0x290] sm:$0xff]  ;;  %v48_v12 = vld [vmem:[#allocation2 + $0x40] sm:$0x3f] }
  0x63   :  { %514 = vmatpush1.msra.mxu0 %v238_v13  ;;  %460 = vmatprep.subr.mxu1 %v179_v14  ;;  %v191_v63 = vld [vmem:[#allocation5 + $0x458] sm:$0xff]  ;;  %v190_v2 = vld [vmem:[#allocation5 + $0x450] sm:$0xff] }
  0x64   :  { %515 = vmatprep.subr.mxu0 %v235_v15  ;;  %461 = vmatpush2.msra.mxu1 %v178_v16  ;;  %v131_v4 = vld [vmem:[#allocation5 + $0x278] sm:$0xff]  ;;  %v130_v9 = vld [vmem:[#allocation5 + $0x270] sm:$0xff] }
  0x65   :  { %516 = vmatpush1.msra.mxu0 %v234_v17  ;;  %462 = vmatprep.subr.mxu1 %v175_v18  ;;  %v187_v5 = vld [vmem:[#allocation5 + $0x438] sm:$0xff]  ;;  %v186_v11 = vld [vmem:[#allocation5 + $0x430] sm:$0xff] }
  0x66   :  { %517 = vmatprep.subr.mxu0 %v231_v19  ;;  %463 = vmatpush2.msra.mxu1 %v174_v20  ;;  %v51_v7 = vld [vmem:[#allocation2 + $0x58] sm:$0x3f]  ;;  %v50_v13 = vld [vmem:[#allocation2 + $0x50] sm:$0x3f] }
  0x67   :  { %518 = vmatpush1.msra.mxu0 %v230_v21  ;;  %464 = vmatprep.subr.mxu1 %v171_v22  ;;  %v127_v14 = vld [vmem:[#allocation5 + $0x258] sm:$0xff]  ;;  %v126_v16 = vld [vmem:[#allocation5 + $0x250] sm:$0xff] }
  0x68   :  { %519 = vmatprep.subr.mxu0 %v227_v23  ;;  %465 = vmatpush2.msra.mxu1 %v170_v24  ;;  %v183_v15 = vld [vmem:[#allocation5 + $0x418] sm:$0xff]  ;;  %v182_v17 = vld [vmem:[#allocation5 + $0x410] sm:$0xff] }
  0x69   :  { %520 = vmatpush1.msra.mxu0 %v226_v25  ;;  %466 = vmatprep.subr.mxu1 %v167_v26  ;;  %v123_v18 = vld [vmem:[#allocation5 + $0x238] sm:$0xff]  ;;  %v122_v20 = vld [vmem:[#allocation5 + $0x230] sm:$0xff] }
  0x6a   :  { %521 = vmatprep.subr.mxu0 %v223_v27  ;;  %467 = vmatpush2.msra.mxu1 %v166_v28  ;;  %v251_v19 = vld [vmem:[#allocation5 + $0x638] sm:$0xff]  ;;  %v250_v21 = vld [vmem:[#allocation5 + $0x630] sm:$0xff] }
  0x6b   :  { %522 = vmatpush1.msra.mxu0 %v222_v29  ;;  %468 = vmatprep.subr.mxu1 %v163_v30  ;;  %v119_v22 = vld [vmem:[#allocation5 + $0x218] sm:$0xff]  ;;  %v118_v24 = vld [vmem:[#allocation5 + $0x210] sm:$0xff] }
  0x6c   :  { %523 = vmatprep.subr.mxu0 %v219_v31  ;;  %469 = vmatpush2.msra.mxu1 %v162_v32  ;;  %v247_v23 = vld [vmem:[#allocation5 + $0x618] sm:$0xff]  ;;  %v246_v25 = vld [vmem:[#allocation5 + $0x610] sm:$0xff] }
  0x6d   :  { %524 = vmatpush1.msra.mxu0 %v218_v33  ;;  %470 = vmatprep.subr.mxu1 %v159_v34 }
  0x6e   :  { %525 = vmatprep.subr.mxu0 %v215_v35  ;;  %471 = vmatpush2.msra.mxu1 %v158_v36 }
  0x6f   :  { %526 = vmatpush1.msra.mxu0 %v214_v37  ;;  %472 = vmatprep.subr.mxu1 %v155_v38 }
  0x70   :  { %527 = vmatprep.subr.mxu0 %v211_v39  ;;  %473 = vmatpush2.msra.mxu1 %v154_v40 }
  0x71   :  { %528 = vmatpush1.msra.mxu0 %v210_v41  ;;  %474 = vmatprep.subr.mxu1 %v151_v42 }
  0x72   :  { %529 = vmatprep.subr.mxu0 %v207_v43  ;;  %475 = vmatpush2.msra.mxu1 %v150_v44 }
  0x73   :  { %530 = vmatpush1.msra.mxu0 %v206_v45  ;;  %476 = vmatprep.subr.mxu1 %v147_v46 }
  0x74   :  { %531 = vmatprep.subr.mxu0 %v203_v47  ;;  %477 = vmatpush2.msra.mxu1 %v146_v48 }
  0x75   :  { %532 = vmatpush1.msra.mxu0 %v202_v49  ;;  %478 = vmatprep.subr.mxu1 %v143_v50 }
  0x76   :  { %533 = vmatprep.subr.mxu0 %v199_v51  ;;  %479 = vmatpush2.msra.mxu1 %v142_v52 }
  0x77   :  { %534 = vmatpush1.msra.mxu0 %v198_v53  ;;  %480 = vmatprep.subr.mxu1 %v139_v54 }
  0x78   :  { %535 = vmatprep.subr.mxu0 %v195_v55  ;;  %332 = vmatprep.mubr.f32.mxu0 %v746_v56 }
  0x79   :  { %625 = vmatprep.mubr.msk.f32.mxu1 %vm252_vm0, %v748_v57  ;;  %481 = vmatpush2.msra.mxu1 %v138_v58 }
  0x7a   :  { %536 = vmatpush1.msra.mxu0 %v194_v59  ;;  %416 = vmatmul.mubr.f32.gmra.mxu1 %v46_v61 }
  0x7b   :  { %333 = vmatmul.mubr.f32.gmra.mxu0 %v44_v60  ;;  %482 = vmatprep.subr.mxu1 %v135_v62 }
  0x7c   :  { %537 = vmatprep.subr.mxu0 %v191_v63  ;;  %483 = vmatpush2.msra.mxu1 %v134_v0 }
  0x7d   :  { %538 = vmatpush1.msra.mxu0 %v190_v2  ;;  %484 = vmatprep.subr.mxu1 %v131_v4 }
  0x7e   :  { %539 = vmatprep.subr.mxu0 %v187_v5  ;;  %338 = vmatprep.mubr.f32.mxu0 %v49_v6 }
  0x7f   :  { %626 = vmatprep.mubr.msk.f32.mxu1 %vm252_vm0, %v51_v7  ;;  %485 = vmatpush2.msra.mxu1 %v130_v9 }
  0x80   :  { %540 = vmatpush1.msra.mxu0 %v186_v11  ;;  %422 = vmatmul.mubr.f32.gmra.mxu1 %v50_v13 }
  0x81   :  { %339 = vmatmul.mubr.f32.gmra.mxu0 %v48_v12  ;;  %486 = vmatprep.subr.mxu1 %v127_v14 }
  0x82   :  { %541 = vmatprep.subr.mxu0 %v183_v15  ;;  %487 = vmatpush2.msra.mxu1 %v126_v16 }
  0x83   :  { %542 = vmatpush1.msra.mxu0 %v182_v17  ;;  %488 = vmatprep.subr.mxu1 %v123_v18 }
  0x84   :  { %571 = vmatprep.subr.mxu0 %v251_v19  ;;  %489 = vmatpush2.msra.mxu1 %v122_v20 }
  0x85   :  { %572 = vmatpush2.msra.mxu0 %v250_v21  ;;  %490 = vmatprep.subr.mxu1 %v119_v22 }
  0x86   :  { %573 = vmatprep.subr.mxu0 %v247_v23  ;;  %491 = vmatpush2.msra.mxu1 %v118_v24 }
  0x87   :  { %492 = vmatprep.mubr.f32.mxu1 %v740_v1  ;;  %574 = vmatpush2.msra.mxu0 %v246_v25 }
  0x88   :  { %627 = vmatprep.mubr.msk.f32.mxu0 %vm252_vm0, %v733_v8  ;;  %493 = vmatmul.mubr.f32.vlgmr.msra.gmra.mxu1 %v742_v3 }
  0x89   :  { %576 = vmatmul.mubr.f32.vlgmr.msra.gmra.mxu0 %v735_v10  ;;  %498 = vmatprep.mubr.f32.mxu1 %v746_v56 }
  0x8a   :  { %628 = vmatprep.mubr.msk.f32.mxu0 %vm252_vm0, %v748_v57 }
  0x8c   :  { %499 = vmatmul.mubr.f32.gmra.mxu1 %v44_v60 }
  0x8d   :  { %582 = vmatmul.mubr.f32.gmra.mxu0 %v46_v61  ;;  %504 = vmatprep.mubr.f32.mxu1 %v49_v6 }
  0x8e   :  { %629 = vmatprep.mubr.msk.f32.mxu0 %vm252_vm0, %v51_v7 }
  0x90   :  { %505 = vmatmul.mubr.f32.gmra.mxu1 %v48_v12 }
  0x91   :  { %588 = vmatmul.mubr.f32.gmra.mxu0 %v50_v13 }
 0x102   :  { %v411_v1 = vpop.f32.mrf.mxu1 }
 0x104   :  { %v413_v8 = vpop.f32.mrf.mxu1 }
 0x11f   :  { %v328_v26 = vpop.f32.mrf.mxu0 }
 0x120   :  { %v412_v27 = vadd.f32 %v411_v1, %v328_v26 }
 0x121   :  { %v330_v28 = vpop.f32.mrf.mxu0 }
 0x122   :  { %594 = vst [vmem:[#allocation7] sm:$0xff] %v412_v27  ;;  %v414_v3 = vadd.f32 %v413_v8, %v330_v28 }
 0x124   :  { %595 = vst [vmem:[#allocation7 + $0x8] sm:$0xff] %v414_v3 }
 0x13a   :  { %v417_v29 = vpop.f32.mrf.mxu1 }
 0x13b   :  { %v334_v10 = vpop.f32.mrf.mxu0 }
 0x13c   :  { %v418_v30 = vadd.f32 %v417_v29, %v334_v10  ;;  %v419_v32 = vpop.f32.mrf.mxu1 }
 0x13d   :  { %v336_v31 = vpop.f32.mrf.mxu0 }
 0x13e   :  { %598 = vst [vmem:[#allocation7 + $0x20] sm:$0xff] %v418_v30  ;;  %v420_v33 = vadd.f32 %v419_v32, %v336_v31 }
 0x140   :  { %599 = vst [vmem:[#allocation7 + $0x28] sm:$0xff] %v420_v33  ;;  %v423_v35 = vpop.f32.mrf.mxu1 }
 0x141   :  { %v340_v34 = vpop.f32.mrf.mxu0 }
 0x142   :  { %v424_v36 = vadd.f32 %v423_v35, %v340_v34  ;;  %v425_v38 = vpop.f32.mrf.mxu1 }
 0x143   :  { %v342_v37 = vpop.f32.mrf.mxu0 }
 0x144   :  { %602 = vst [vmem:[#allocation7 + $0x40] sm:$0x3f] %v424_v36  ;;  %v426_v39 = vadd.f32 %v425_v38, %v342_v37 }
 0x146   :  { %603 = vst [vmem:[#allocation7 + $0x48] sm:$0x3f] %v426_v39 }
 0x148   :  { %v494_v40 = vpop.f32.mrf.mxu1 }
 0x149   :  { %v577_v41 = vpop.f32.mrf.mxu0 }
 0x14a   :  { %v578_v42 = vadd.f32 %v577_v41, %v494_v40  ;;  %v496_v43 = vpop.f32.mrf.mxu1 }
 0x14b   :  { %v579_v44 = vpop.f32.mrf.mxu0 }
 0x14c   :  { %596 = vst [vmem:[#allocation7 + $0x10] sm:$0xff] %v578_v42  ;;  %v580_v45 = vadd.f32 %v579_v44, %v496_v43  ;;  %v500_v46 = vpop.f32.mrf.mxu1 }
 0x14d   :  { %v583_v47 = vpop.f32.mrf.mxu0 }
 0x14e   :  { %597 = vst [vmem:[#allocation7 + $0x18] sm:$0xff] %v580_v45  ;;  %v584_v48 = vadd.f32 %v583_v47, %v500_v46  ;;  %v502_v49 = vpop.f32.mrf.mxu1 }
 0x14f   :  { %v585_v50 = vpop.f32.mrf.mxu0 }
 0x150   :  { %600 = vst [vmem:[#allocation7 + $0x30] sm:$0xff] %v584_v48  ;;  %v586_v51 = vadd.f32 %v585_v50, %v502_v49  ;;  %v506_v52 = vpop.f32.mrf.mxu1 }
 0x151   :  { %v589_v53 = vpop.f32.mrf.mxu0 }
 0x152   :  { %601 = vst [vmem:[#allocation7 + $0x38] sm:$0xff] %v586_v51  ;;  %v590_v54 = vadd.f32 %v589_v53, %v506_v52  ;;  %v508_v55 = vpop.f32.mrf.mxu1 }
 0x153   :  { %v591_v56 = vpop.f32.mrf.mxu0 }
 0x154   :  { %604 = vst [vmem:[#allocation7 + $0x50] sm:$0x3f] %v590_v54  ;;  %v592_v57 = vadd.f32 %v591_v56, %v508_v55 }
 0x156   :  { %605 = vst [vmem:[#allocation7 + $0x58] sm:$0x3f] %v592_v57 }
 0x157   :  { %686 = shalt.err (!%p683_p0)
}
 0x158   :  { %617 = dma.vmem_to_hbm [thread:$0]  %s612_s1, 1536, %s771_s2, [#allocation4], %s702_s12, %s702_s12, %s703_s13  }
 0x159   :  { %699 = dma.done.wait [#allocation4], 1536  }
 0x15a   :  { %700 = vsyncadd [#allocation4], 4294965760 }
 0x15b   :  { %621 = vsyncpa [#allocation3], 1 }
 0x15c   :  { %622 = vsyncpa [#allocation6], 1 }
 0x15d   :  { %623 = vsyncpa [#allocation4], 1 }

</bundles_post_ra>
